<compile_context>
chip_gen: v7x
topology: tpu7x:2x2x1
jax: 0.10.0
libtpu: 0.0.40
codegen_flags: <defaults>
</compile_context>

<pallas_src>
import functools

import jax
import jax.numpy as jnp
from jax.experimental import pallas as pl
from jax.experimental.pallas import tpu as pltpu


def _round_up(x, m):
    return ((x + m - 1) // m) * m


def _pick_tile(hw, target):
    """Largest divisor of hw that is a multiple of 8 and <= target, else hw."""
    if hw <= target:
        return hw
    t = (min(target, hw) // 8) * 8
    while t >= 8:
        if hw % t == 0:
            return t
        t -= 8
    return hw  # no 8-multiple divisor <= target; full extent is always legal


def _vmem_capacity_bytes():
    """Physical VMEM of the current TPU generation; conservative fallback."""
    try:
        info = pltpu.get_tpu_info()
        cap = getattr(info, "vmem_capacity_bytes", None)
        if cap:
            return int(cap)
    except Exception:
        pass
    return 64 * 1024 * 1024  # assume v7x-sized VMEM if the query fails


# ----------------------------------------------------------------------------
# Phase 1: fused projection pass (runs once per pixel; hoisted out of the
# flash loop so key projections are not recomputed nq times).
# ----------------------------------------------------------------------------
def _proj_kernel(x_ref, w_all_ref, b_all_ref, q_ref, kv_ref, *, cp,
                 compute_dtype):
    x = x_ref[0].astype(compute_dtype)                               # (tp, C_pad)
    proj = jnp.dot(x, w_all_ref[...],
                   preferred_element_type=jnp.float32) + b_all_ref[...]
    proj = proj.astype(compute_dtype)                                # (tp, 3*Cp)
    q_ref[0] = proj[:, :cp]            # phi      (query side), 128-aligned slice
    kv_ref[0] = proj[:, cp:]           # [theta|g] (key side),  128-aligned slice


# ----------------------------------------------------------------------------
# Phase 2: flash-style non-local attention + output projection + residual.
# ----------------------------------------------------------------------------
def _nl_flash_kernel(phi_ref, kv_ref, xq_ref, ww_ref, bw_ref, o_ref,
                     m_sc, l_sc, acc_sc, *, cp, compute_dtype):
    ki = pl.program_id(2)
    nk = pl.num_programs(2)
    cdt = compute_dtype
    approx = cdt != jnp.float32        # exact reciprocal in the f32 path

    @pl.when(ki == 0)
    def _init():
        m_sc[...] = jnp.full(m_sc.shape, -jnp.inf, jnp.float32)
        l_sc[...] = jnp.zeros(l_sc.shape, jnp.float32)
        acc_sc[...] = jnp.zeros(acc_sc.shape, jnp.float32)

    kv = kv_ref[0]                     # (tk, 2*Cp), already compute dtype
    th_k = kv[:, :cp]                  # theta(k)
    g_k = kv[:, cp:]                   # g(k)

    # Affinity in MXU-native NT form (contract last dims; no transpose).
    s = jax.lax.dot_general(
        phi_ref[0], th_k,
        dimension_numbers=(((1,), (1,)), ((), ())),
        preferred_element_type=jnp.float32)                          # (tq, tk)

    # Online softmax update (all f32).  No 1/sqrt(d) scaling, matching the
    # PyTorch module; the running-max subtraction is what keeps exp() stable.
    m_prev = m_sc[...]
    m_new = jnp.maximum(m_prev, jnp.max(s, axis=-1, keepdims=True))
    alpha = jnp.exp(m_prev - m_new)
    p = jnp.exp(s - m_new)
    l_sc[...] = alpha * l_sc[...] + jnp.sum(p, axis=-1, keepdims=True)
    acc_sc[...] = alpha * acc_sc[...] + jnp.dot(
        p.astype(cdt), g_k, preferred_element_type=jnp.float32)
    m_sc[...] = m_new

    @pl.when(ki == nk - 1)
    def _finalize():
        y = acc_sc[...] * pl.reciprocal(l_sc[...], approx=approx)    # (tq, Cp)
        z = jnp.dot(y.astype(cdt), ww_ref[...],
                    preferred_element_type=jnp.float32)
        z = z + bw_ref[...] + xq_ref[0].astype(jnp.float32)          # residual
        o_ref[0] = z.astype(o_ref.dtype)                             # lane-dense store


def nonlocal_block_flat(x_flat, params, *, tq=None, tk=None, tp=None,
                        kv_buffers=None, compute_dtype=jnp.bfloat16):
    """Non-local block on channels-last flattened pixels: x_flat is [B, HW, C]."""
    B, HW, C = x_flat.shape
    Ci = max(C // 2, 1)
    # Inter-channels: 128-aligned; 256-aligned once Ci > 128 so the affinity
    # contraction fills v6e/v7x's 256-wide MXU (128 is already ideal on v5e).
    Cp = _round_up(Ci, 128) if Ci <= 128 else _round_up(Ci, 256)
    C_pad = _round_up(C, 128)          # lane-dense in/out channels (unmasked vst)

    f32 = jnp.float32
    cd_bytes = jnp.dtype(compute_dtype).itemsize
    x_bytes = jnp.dtype(x_flat.dtype).itemsize
    out_bytes = x_bytes

    # Generation-aware VMEM budget (~38 MiB on v7x, ~76 MiB on v5e/v6e).
    vmem_budget = int(_vmem_capacity_bytes() * 0.6)

    # Tile selection: bigger key tiles amortize per-step overhead; if the whole
    # projected [theta|g] block for a batch fits comfortably, keep it resident
    # (tk = HW -> fetched once per batch instead of re-streamed per q tile).
    tq = _pick_tile(HW, 256) if tq is None else tq
    if tk is None:
        kv_resident_bytes = 2 * HW * 2 * Cp * cd_bytes   # incl. double-buffering
        tk = HW if kv_resident_bytes <= vmem_budget // 3 else _pick_tile(HW, 512)
    tp = _pick_tile(HW, 512) if tp is None else tp
    for t in (tq, tk, tp):
        assert HW % t == 0 and (t % 8 == 0 or t == HW), \
            "tile sizes must divide H*W and be multiples of 8 (or the full extent)"

    def _flash_bytes(tq_, tk_):
        return (2 * tq_ * Cp * cd_bytes            # phi(q) block (dbl-buffered)
                + 2 * tk_ * 2 * Cp * cd_bytes      # [theta|g](k) block
                + 2 * tq_ * C_pad * x_bytes        # residual x block
                + 2 * Cp * C_pad * cd_bytes        # Ww
                + 2 * C_pad * 4                    # bw
                + 2 * tq_ * C_pad * out_bytes      # output block
                + 4 * (tq_ * Cp + 2 * tq_)         # f32 scratch (acc, m, l)
                + 4 * (3 * tq_ * tk_ + 2 * tq_ * Cp))  # live intermediates

    # Defensive shrink if the chosen tiles would blow the per-gen VMEM budget.
    while (_flash_bytes(tq, tk) > vmem_budget and tk >= 16
           and HW % (tk // 2) == 0 and (tk // 2) % 8 == 0):
        tk //= 2
    while (_flash_bytes(tq, tk) > vmem_budget and tq >= 16
           and HW % (tq // 2) == 0 and (tq // 2) % 8 == 0):
        tq //= 2
    nq, nk = HW // tq, HW // tk

    # ----- weight / input padding (all padded lanes are exactly zero) -----
    def pad_proj(w, b):
        wpad = jnp.zeros((C_pad, Cp), f32).at[:C, :Ci].set(w.astype(f32))
        bpad = jnp.zeros((1, Cp), f32).at[:, :Ci].set(b.astype(f32))
        return wpad, bpad

    wp_p, bp_p = pad_proj(params["wp"], params["bp"])   # phi
    wt_p, bt_p = pad_proj(params["wt"], params["bt"])   # theta
    wg_p, bg_p = pad_proj(params["wg"], params["bg"])   # g
    # Fused projection weight ordered [phi | theta | g]; each block Cp lanes.
    w_all = jnp.concatenate([wp_p, wt_p, wg_p], axis=1).astype(compute_dtype)
    b_all = jnp.concatenate([bp_p, bt_p, bg_p], axis=1)             # f32
    ww_pad = (jnp.zeros((Cp, C_pad), f32).at[:Ci, :C].set(params["ww"].astype(f32))
              .astype(compute_dtype))
    bw_pad = jnp.zeros((1, C_pad), f32).at[:, :C].set(params["bw"].astype(f32))

    x_pad = x_flat if C == C_pad else jnp.pad(
        x_flat, ((0, 0), (0, 0), (0, C_pad - C)))

    # ----- Phase 1: projections (once per pixel) -----
    proj_est = (2 * tp * C_pad * x_bytes
                + 2 * C_pad * 3 * Cp * cd_bytes + 2 * 3 * Cp * 4
                + 2 * tp * Cp * cd_bytes + 2 * tp * 2 * Cp * cd_bytes
                + 4 * tp * 3 * Cp)
    proj_vmem = int(min(max(2 * proj_est, 32 * 1024 * 1024), vmem_budget))

    q_proj, kv_proj = pl.pallas_call(
        functools.partial(_proj_kernel, cp=Cp, compute_dtype=compute_dtype),
        out_shape=(jax.ShapeDtypeStruct((B, HW, Cp), compute_dtype),
                   jax.ShapeDtypeStruct((B, HW, 2 * Cp), compute_dtype)),
        grid_spec=pltpu.PrefetchScalarGridSpec(
            num_scalar_prefetch=0,
            grid=(B, HW // tp),
            in_specs=[
                pl.BlockSpec((1, tp, C_pad), lambda b, i: (b, i, 0)),
                pl.BlockSpec((C_pad, 3 * Cp), lambda b, i: (0, 0)),
                pl.BlockSpec((1, 3 * Cp), lambda b, i: (0, 0)),
            ],
            out_specs=[
                pl.BlockSpec((1, tp, Cp), lambda b, i: (b, i, 0)),
                pl.BlockSpec((1, tp, 2 * Cp), lambda b, i: (b, i, 0)),
            ],
        ),
        compiler_params=pltpu.CompilerParams(
            dimension_semantics=("parallel", "parallel"),
            vmem_limit_bytes=proj_vmem,
        ),
    )(x_pad, w_all, b_all)

    # ----- Phase 2: flash non-local attention + W projection + residual -----
    flash_vmem = int(min(max(2 * _flash_bytes(tq, tk), 32 * 1024 * 1024),
                         vmem_budget))

    kv_spec_kwargs = {}
    if kv_buffers is not None:   # deepen key pipelining only if a trace shows exposed DMA
        kv_spec_kwargs["pipeline_mode"] = pl.Buffered(kv_buffers)
    kv_spec = pl.BlockSpec((1, tk, 2 * Cp), lambda b, qi, ki: (b, ki, 0),
                           **kv_spec_kwargs)

    out_pad = pl.pallas_call(
        functools.partial(_nl_flash_kernel, cp=Cp, compute_dtype=compute_dtype),
        out_shape=jax.ShapeDtypeStruct((B, HW, C_pad), x_flat.dtype),
        grid_spec=pltpu.PrefetchScalarGridSpec(
            num_scalar_prefetch=0,
            grid=(B, nq, nk),
            in_specs=[
                pl.BlockSpec((1, tq, Cp), lambda b, qi, ki: (b, qi, 0)),      # phi(q)
                kv_spec,                                                      # [theta|g](k)
                pl.BlockSpec((1, tq, C_pad), lambda b, qi, ki: (b, qi, 0)),   # x residual
                pl.BlockSpec((Cp, C_pad), lambda b, qi, ki: (0, 0)),          # Ww
                pl.BlockSpec((1, C_pad), lambda b, qi, ki: (0, 0)),           # bw
            ],
            out_specs=pl.BlockSpec((1, tq, C_pad), lambda b, qi, ki: (b, qi, 0)),
            scratch_shapes=[
                pltpu.VMEM((tq, 1), jnp.float32),    # running max
                pltpu.VMEM((tq, 1), jnp.float32),    # running denom
                pltpu.VMEM((tq, Cp), jnp.float32),   # output accumulator
            ],
        ),
        compiler_params=pltpu.CompilerParams(
            # key-tile reduction last; batch / q-tile axes shardable across
            # v7x's two TensorCores (ensure B*nq >= 2 for full chip use there).
            dimension_semantics=("parallel", "parallel", "arbitrary"),
            vmem_limit_bytes=flash_vmem,
        ),
    )(q_proj, kv_proj, x_pad, ww_pad, bw_pad)

    return out_pad if C == C_pad else out_pad[:, :, :C]


def nonlocal_block(x_nchw, params, **kwargs):
    """Spec-parity NCHW wrapper. Prefer nonlocal_block_flat ([B, HW, C]) in a
    real model to avoid the two HBM-round-trip layout transposes below."""
    B, C, H, W = x_nchw.shape
    x_flat = jnp.transpose(x_nchw, (0, 2, 3, 1)).reshape(B, H * W, C)
    out = nonlocal_block_flat(x_flat, params, **kwargs)
    return jnp.transpose(out.reshape(B, H, W, C), (0, 3, 1, 2))


def _reference(x_nchw, params, compute_dtype=jnp.float32):
    """Pure-JAX reference matching the PyTorch forward; matmul operands cast to
    compute_dtype (f32 accumulation) so the bf16 path checks apples-to-apples."""
    B, C, H, W = x_nchw.shape
    cdt = compute_dtype
    xf = jnp.transpose(x_nchw, (0, 2, 3, 1)).reshape(B, H * W, C)
    x_c = xf.astype(cdt)

    def proj(w, b):
        return jnp.einsum("bic,cd->bid", x_c, w.astype(cdt),
                          preferred_element_type=jnp.float32) + b

    g = proj(params["wg"], params["bg"])
    th = proj(params["wt"], params["bt"])
    ph = proj(params["wp"], params["bp"])
    f = jnp.einsum("bic,bjc->bij", ph.astype(cdt), th.astype(cdt),
                   preferred_element_type=jnp.float32)
    p = jax.nn.softmax(f, axis=-1)
    y = jnp.einsum("bij,bjc->bic", p.astype(cdt), g.astype(cdt),
                   preferred_element_type=jnp.float32)
    z = jnp.einsum("bic,cd->bid", y.astype(cdt), params["ww"].astype(cdt),
                   preferred_element_type=jnp.float32) + params["bw"] + xf
    return jnp.transpose(z.reshape(B, H, W, C), (0, 3, 1, 2))


def make_params(key, C):
    Ci = max(C // 2, 1)
    ks = jax.random.split(key, 8)
    scale_in = 1.0 / jnp.sqrt(C)
    scale_mid = 1.0 / jnp.sqrt(Ci)
    return {
        # weights stored pre-transposed for [HW, C] @ [C, Ci] matmuls
        "wg": jax.random.normal(ks[0], (C, Ci), jnp.float32) * scale_in,
        "bg": jax.random.normal(ks[1], (1, Ci), jnp.float32) * scale_in,
        "wt": jax.random.normal(ks[2], (C, Ci), jnp.float32) * scale_in,
        "bt": jax.random.normal(ks[3], (1, Ci), jnp.float32) * scale_in,
        "wp": jax.random.normal(ks[4], (C, Ci), jnp.float32) * scale_in,
        "bp": jax.random.normal(ks[5], (1, Ci), jnp.float32) * scale_in,
        "ww": jax.random.normal(ks[6], (Ci, C), jnp.float32) * scale_mid,
        "bw": jax.random.normal(ks[7], (1, C), jnp.float32) * scale_mid,
    }


if __name__ == "__main__":
    key = jax.random.PRNGKey(0)
    kx, kp = jax.random.split(key)

    B, C, H, W = 2, 4, 16, 16
    x = jax.random.normal(kx, (B, C, H, W), jnp.float32)
    params = make_params(kp, C)

    # Exact-f32 path with explicit tq=128 / tk=64 so the multi-tile online
    # softmax path is exercised (flash grid = (2, 2, 4)).
    out_f32 = jax.block_until_ready(
        nonlocal_block(x, params, tq=128, tk=64, compute_dtype=jnp.float32))
    ref_f32 = jax.block_until_ready(_reference(x, params, jnp.float32))
    assert out_f32.shape == (B, C, H, W)
    assert jnp.allclose(out_f32, ref_f32, atol=1e-4, rtol=1e-4), \
        "f32 kernel mismatch vs reference"

    # bf16-MXU path (f32 accumulation + f32 softmax/residual), checked against
    # the reference with the same bf16 matmul-operand casts.
    out_bf16 = jax.block_until_ready(
        nonlocal_block(x, params, tq=128, tk=64, compute_dtype=jnp.bfloat16))
    ref_bf16 = jax.block_until_ready(_reference(x, params, jnp.bfloat16))
    assert jnp.allclose(out_bf16, ref_bf16, atol=2e-2, rtol=2e-2), \
        "bf16 kernel mismatch vs bf16-matched reference"

    # Default tile selection (resident full-sequence key block, nk == 1).
    out_def = jax.block_until_ready(
        nonlocal_block(x, params, compute_dtype=jnp.bfloat16))
    assert jnp.allclose(out_def, ref_bf16, atol=2e-2, rtol=2e-2), \
        "default-tile kernel mismatch"

    print("KERNEL_OK")
</pallas_src>

<mosaic_0001>
module attributes {stable_mosaic.version = 11 : i64} {
  func.func @_proj_kernel(%arg0: i32, %arg1: i32, %arg2: memref<1x256x128xf32, #tpu.memory_space<vmem>>, %arg3: memref<128x384xf32, #tpu.memory_space<vmem>>, %arg4: memref<1x384xf32, #tpu.memory_space<vmem>>, %arg5: memref<1x256x128xf32, #tpu.memory_space<vmem>>, %arg6: memref<1x256x256xf32, #tpu.memory_space<vmem>>) attributes {dimension_semantics = [#tpu.dimension_semantics<parallel>, #tpu.dimension_semantics<parallel>], iteration_bounds = array<i64: 2, 1>, scalar_prefetch = 0 : i64, scratch_operands = 0 : i64, tpu.core_type = #tpu.core_type<tc>, window_params = [{transform_indices = @transform_0, window_bounds = array<i64: 1, 256, 128>}, {pipeline_mode = #tpu.pipeline_mode<synchronous>, transform_indices = @transform_1, window_bounds = array<i64: 128, 384>}, {pipeline_mode = #tpu.pipeline_mode<synchronous>, transform_indices = @transform_2, window_bounds = array<i64: 1, 384>}, {transform_indices = @transform_3, window_bounds = array<i64: 1, 256, 128>}, {transform_indices = @transform_4, window_bounds = array<i64: 1, 256, 256>}]} {
    %c0 = arith.constant 0 : index
    %c0_0 = arith.constant 0 : index
    %c0_1 = arith.constant 0 : index
    %0 = vector.load %arg2[%c0, %c0_0, %c0_1] : memref<1x256x128xf32, #tpu.memory_space<vmem>>, vector<1x256x128xf32>
    %1 = vector.shape_cast %0 : vector<1x256x128xf32> to vector<256x128xf32>
    %c0_2 = arith.constant 0 : index
    %c0_3 = arith.constant 0 : index
    %2 = vector.load %arg3[%c0_2, %c0_3] : memref<128x384xf32, #tpu.memory_space<vmem>>, vector<128x384xf32>
    %cst = arith.constant dense<0.000000e+00> : vector<256x384xf32>
    %3 = tpu.matmul %1, %2, %cst {dimension_numbers = #tpu.dot_dimension_numbers<[1], [0], [0], [1], [0, 0, 1, 1], [], []>} : vector<256x128xf32>, vector<128x384xf32>, vector<256x384xf32> -> vector<256x384xf32>
    %c0_4 = arith.constant 0 : index
    %c0_5 = arith.constant 0 : index
    %4 = vector.load %arg4[%c0_4, %c0_5] : memref<1x384xf32, #tpu.memory_space<vmem>>, vector<1x384xf32>
    %5 = vector.broadcast %4 : vector<1x384xf32> to vector<256x384xf32>
    %6 = arith.addf %3, %5 : vector<256x384xf32>
    %7 = vector.extract_strided_slice %6 {offsets = [0, 0], sizes = [256, 128], strides = [1, 1]} : vector<256x384xf32> to vector<256x128xf32>
    %c0_6 = arith.constant 0 : index
    %c0_7 = arith.constant 0 : index
    %c0_8 = arith.constant 0 : index
    %8 = vector.load %arg5[%c0_6, %c0_7, %c0_8] : memref<1x256x128xf32, #tpu.memory_space<vmem>>, vector<1x256x128xf32>
    %9 = vector.shape_cast %8 : vector<1x256x128xf32> to vector<256x128xf32>
    %10 = vector.shape_cast %7 : vector<256x128xf32> to vector<1x256x128xf32>
    tpu.vector_store %arg5[%c0_6, %c0_7, %c0_8], %10 {strides = array<i32>} : memref<1x256x128xf32, #tpu.memory_space<vmem>>, vector<1x256x128xf32>,
    %11 = vector.extract_strided_slice %6 {offsets = [0, 128], sizes = [256, 256], strides = [1, 1]} : vector<256x384xf32> to vector<256x256xf32>
    %c0_9 = arith.constant 0 : index
    %c0_10 = arith.constant 0 : index
    %c0_11 = arith.constant 0 : index
    %12 = vector.load %arg6[%c0_9, %c0_10, %c0_11] : memref<1x256x256xf32, #tpu.memory_space<vmem>>, vector<1x256x256xf32>
    %13 = vector.shape_cast %12 : vector<1x256x256xf32> to vector<256x256xf32>
    %14 = vector.shape_cast %11 : vector<256x256xf32> to vector<1x256x256xf32>
    tpu.vector_store %arg6[%c0_9, %c0_10, %c0_11], %14 {strides = array<i32>} : memref<1x256x256xf32, #tpu.memory_space<vmem>>, vector<1x256x256xf32>,
    return
  }
  func.func @transform_0(%arg0: i32, %arg1: i32) -> (i32, i32, i32) {
    %c0_i32 = arith.constant 0 : i32
    %c0_i32_0 = arith.constant 0 : i32
    return %arg0, %arg1, %c0_i32 : i32, i32, i32
  }
  func.func @transform_1(%arg0: i32, %arg1: i32) -> (i32, i32) {
    %c0_i32 = arith.constant 0 : i32
    %c0_i32_0 = arith.constant 0 : i32
    %c0_i32_1 = arith.constant 0 : i32
    return %c0_i32, %c0_i32_0 : i32, i32
  }
  func.func @transform_2(%arg0: i32, %arg1: i32) -> (i32, i32) {
    %c0_i32 = arith.constant 0 : i32
    %c0_i32_0 = arith.constant 0 : i32
    %c0_i32_1 = arith.constant 0 : i32
    return %c0_i32, %c0_i32_0 : i32, i32
  }
  func.func @transform_3(%arg0: i32, %arg1: i32) -> (i32, i32, i32) {
    %c0_i32 = arith.constant 0 : i32
    %c0_i32_0 = arith.constant 0 : i32
    return %arg0, %arg1, %c0_i32 : i32, i32, i32
  }
  func.func @transform_4(%arg0: i32, %arg1: i32) -> (i32, i32, i32) {
    %c0_i32 = arith.constant 0 : i32
    %c0_i32_0 = arith.constant 0 : i32
    return %arg0, %arg1, %c0_i32 : i32, i32, i32
  }
}

</mosaic_0001>

<bundles_post_ra>
// kernel: tpu_custom_call.1
= control target key start
LH: loop header
LB: loop body
LE: loop exit
PB: predicated region body
PF: predicated region fallthrough
CT: control target
= control target key end

     0   :  { %10 = vsyncpa [#allocation3], 0  ;;  %s2230_s0 = inlined_call_operand.hbm [shape: f32[2,256,128], index: 0, kind: input, shape index: {}]   ;;  %s2231_s1 = inlined_call_operand.hbm [shape: f32[128,384], index: 1, kind: input, shape index: {}]   ;;  %s2232_s2 = inlined_call_operand.vmem [shape: f32[1,384], index: 2, kind: input, shape index: {}]   ;;  %s2233_s3 = inlined_call_operand.hbm [shape: f32[2,256,128], index: 3, kind: output, shape index: {0}]   ;;  %s2234_s4 = inlined_call_operand.hbm [shape: f32[2,256,256], index: 4, kind: output, shape index: {1}]  }
   0x1   :  { %12 = vsyncpa [#allocation3 + $0x1], 0 }
   0x2   :  { %13 = vsyncpa [#allocation6], 0 }
   0x3   :  { %14 = vsyncpa [#allocation4], 0 }
   0x4   :  { %16 = vsyncpa [#allocation4 + $0x1], 0 }
   0x5   :  { %17 = vsyncpa [#allocation9], 0 }
   0x6   :  { %19 = vsyncpa [#allocation9 + $0x1], 0  ;;  %s1647_s15 = smov 0   ;;  %s1649_s16 = smov 0  }
   0x7   :  { %s1651_s17 = smov 0   ;;  %s1653_s18 = smov 0  }
   0x8   :  { %s1655_s19 = smov 0   ;;  %s1657_s20 = smov 0  }
   0x9 LB: > { %s1112_s21 = sadd.s32 4294967295, %s1607_s20   ;;  %s1113_s22 = sadd.s32 4294967294, %s1607_s20   ;;  %s1607_s20 = sphi %s1657_s20, %s25_s20   ;;  %s1603_s19 = sphi %s1655_s19, %s2258_s19   ;;  %s1599_s18 = sphi %s1653_s18, %s2257_s18   ;;  %s1595_s17 = sphi %s1651_s17, %s2256_s17   ;;  %s1591_s16 = sphi %s1649_s16, %s2255_s16   ;;  %s1587_s15 = sphi %s1647_s15, %s2254_s15  }
   0xa   : > { %p59_p0 = scmp.ne.s32.totalorder %s1591_s16, %s1587_s15  ;;  %p1681_p1 = scmp.eq.s32.totalorder %s1112_s21, 0 }
   0xb   : > { %p1685_p2 = scmp.eq.s32.totalorder %s1112_s21, 1  ;;  %p133_p3 = scmp.eq.s32.totalorder %s1113_s22, 1 }
   0xc   : > { %s2239_s23 = scalar_select %p1681_p1, 1, 0 }
   0xd   : > { %s2240_s24 = scalar_select %p1685_p2, 1, 0 }
   0xe   : > { %p1691_p4 = por %p1681_p1, %p59_p0  ;;  %p1114_p5 = scmp.ge.s32.totalorder %s1607_s20, 1 }
   0xf   : > { %p1696_p6 = por %p133_p3, %p59_p0  ;;  %p168_p7 = scmp.lt.s32.totalorder %s1607_s20, 3 }
  0x10   : > { %s2241_s25 = scalar_select %p1691_p4, 1, 0 }
  0x11   : > { %s2242_s26 = scalar_select %p1696_p6, 1, 0 }
  0x12   : > { %p1701_p8 = pnand %p1114_p5, %p168_p7  ;;  %s1609_s28 = smov [#allocation5]  }
  0x13   : > { %s180_s29 = sshll.u32 %s1609_s28, 4  ;;  %s37_s5 = sadd.s32 1, %s1603_s19  ;;  %s181_s29 = int_to_ptr.vmem [resolvable:$true] %s180_s29 }
  0x14   : > { %s2243_s27 = scalar_select %p1701_p8, 1, 0 }
  0x15   : > { %p1354_p9 = pneg %p1701_p8  ;;  %s1431_s8 = scalar_lea.hbm %s2231_s1, 6144 }
  0x16   : > { %p1432_p12 = scmp.ne.s32.totalorder %s2231_s1, %s1431_s8  ;;  %p1438_p5 = scmp.lt.u32.totalorder %s1431_s8, %s2231_s1 }
  0x17   : > { %p1710_p11 = pnand %p1354_p9, %p1681_p1 }
  0x19   : > { %p1433_p13 = pneg %p1710_p11 }
  0x1b   : > { %p1434_p0 = pnand %p1433_p13, %p1432_p12 }
  0x1d   : > { %p1435_p3 = pneg %p1434_p0 }
  0x1f   : > { %p1440_p7 = pnand %p1438_p5, %p1435_p3 }
  0x21   : > { %1443 = shalt.err (!%p1440_p7)
}
  0x22   : > { %s1444_s13 = scalar_lea.vmem %s181_s29, 6144  ;;  %p1452_p1 = scmp.lt.s32.totalorder %s181_s29, %s181_s29 }
  0x23   : > { %p1445_p9 = scmp.ne.s32.totalorder %s181_s29, %s1444_s13  ;;  %p1453_p4 = scmp.lt.s32.totalorder %s1444_s13, %s1444_s13 }
  0x25   : > { %p1447_p10 = pnand %p1445_p9, %p1433_p13  ;;  %p1454_p8 = por %p1453_p4, %p1452_p1 }
  0x27   : > { %p1448_p6 = pneg %p1447_p10 }
  0x29   : > { %p1455_p2 = pnand %p1454_p8, %p1448_p6 }
  0x2b   : > { %1458 = shalt.err (!%p1455_p2)
}
  0x2c   : > { %s1610_s14 = smov 384   ;;  %s1611_s21 = smov 24  }
  0x2d   : > { %1357 = dma.hbm_to_vmem [thread:$0]  (!%p1710_p11), %s2231_s1, 6144, %s181_s29, [#allocation6], %s1610_s14, %s1610_s14, %s1611_s21  }
  0x2e   : > { %p39_p1 = scmp.ge.s32.totalorder %s37_s5, 2  ;;  %s46_s6 = sadd.s32 1, %s1595_s17 }
  0x2f   : > { %p53_p2 = scmp.ne.s32.totalorder %s1595_s17, %s1591_s16  ;;  %p54_p4 = scmp.eq.s32.totalorder %s1607_s20, 0 }
  0x30   : > { %s2260_s5 = smov (%p39_p1, %s37_s5), 0  ;;  %p2246_p8 = scmp.ne.s32.totalorder %s2240_s24, 0 }
  0x31   : > { %p1737_p6 = por %p54_p4, %p53_p2  ;;  %s41_s30 = ssub.s32 %s1603_s19, %s2260_s5 }
  0x32   : > { %p1743_p10 = por %p2246_p8, %p53_p2  ;;  %p1370_p12 = scmp.lt.s32.totalorder %s1607_s20, 2 }
  0x33   : > { %p44_p11 = scmp.eq.s32.totalorder %s41_s30, 0  ;;  %s197_s29 = sand.u32 1, %s1595_s17  }
  0x34   : > { %s1117_s9 = sshll.u32 %s197_s29, 8  ;;  %s1133_s11 = sshll.u32 %s1603_s19, 12 }
  0x35   : > { %s1752_s10 = scalar_select %p44_p11, %s1595_s17, %s46_s6  }
  0x36   : > { %s1758_s14 = scalar_lea.hbm %s2230_s0, %s1133_s11  ;;  %s201_s24 = scalar_lea.vmem [#allocation2], %s1117_s9 }
  0x37   : > { %s210_s21 = sshll.u32 %s201_s24, 4  ;;  %p1764_p13 = pnand %p1370_p12, %p1737_p6  ;;  %s1760_s21 = int_to_ptr.vmem [resolvable:$true] %s210_s21 }
  0x38   : > { %s1768_s28 = scalar_lea.sflag [#allocation3], %s197_s29  ;;  %s1459_s6 = scalar_lea.hbm %s1758_s14, 4096 }
  0x39   : > { %p1460_p0 = scmp.ne.s32.totalorder %s1758_s14, %s1459_s6  ;;  %p1461_p3 = pneg %p1764_p13 }
  0x3a   : > { %s1464_s7 = scalar_lea.hbm %s2230_s0, 8192  ;;  %p1465_p9 = scmp.lt.u32.totalorder %s1758_s14, %s2230_s0 }
  0x3b   : > { %p1462_p5 = pnand %p1461_p3, %p1460_p0  ;;  %p1466_p1 = scmp.lt.u32.totalorder %s1464_s7, %s1459_s6 }
  0x3c   : > { %p1468_p4 = scmp.lt.u32.totalorder %s1459_s6, %s1758_s14 }
  0x3d   : > { %p1463_p7 = pneg %p1462_p5  ;;  %p1467_p2 = por %p1466_p1, %p1465_p9 }
  0x3f   : > { %p1469_p6 = por %p1468_p4, %p1467_p2 }
  0x41   : > { %p1470_p8 = pnand %p1469_p6, %p1463_p7 }
  0x43   : > { %1473 = shalt.err (!%p1470_p8)
}
  0x44   : > { %s1474_s29 = scalar_lea.vmem %s1760_s21, 4096  ;;  %s1612_s13 = smov [#allocation2]  }
  0x45   : > { %p1475_p12 = scmp.ne.s32.totalorder %s1760_s21, %s1474_s29  ;;  %s1479_s24 = sshll.u32 %s1612_s13, 4  ;;  %s1480_s24 = int_to_ptr.vmem [resolvable:$false] %s1479_s24 }
  0x46   : > { %s1481_s30 = scalar_lea.vmem %s1480_s24, 8192  ;;  %p1482_p5 = scmp.lt.s32.totalorder %s1760_s21, %s1480_s24 }
  0x47   : > { %p1477_p11 = pnand %p1475_p12, %p1461_p3  ;;  %p1483_p9 = scmp.lt.s32.totalorder %s1481_s30, %s1474_s29 }
  0x49   : > { %p1478_p0 = pneg %p1477_p11  ;;  %p1484_p1 = por %p1483_p9, %p1482_p5 }
  0x4b   : > { %p1485_p2 = pnand %p1484_p1, %p1478_p0 }
  0x4d   : > { %1488 = shalt.err (!%p1485_p2)
}
  0x4e   : > { %s1613_s6 = smov 128   ;;  %s1614_s9 = smov 8  }
  0x4f   : > { %1361 = dma.hbm_to_vmem [thread:$0]  (!%p1764_p13), %s1758_s14, 4096, %s1760_s21, %s1768_s28, %s1613_s6, %s1613_s6, %s1614_s9  }
  0x50   : > { %p2249_p3 = scmp.ne.s32.totalorder %s2243_s27, 0 }
  0x51   : > { %s1799_s7 = sand.u32 (!%p2249_p3), 1, %s1591_s16   ;;  %p2250_p7 = scmp.ne.s32.totalorder (!%p2249_p3), %s2241_s25, 0 }
  0x52   : > { %222 = sbr.rel (%p2249_p3) target bundleno = 474 (0x1da), region = 32  ;;  %s1121_s11 = sshll.u32 (!%p2249_p3), %s1799_s7, 8 }
  0x53   : > { %s225_s12 = scalar_lea.sflag (!%p2249_p3), [#allocation3], %s1799_s7  ;;  %s1805_s29 = scalar_lea.vmem (!%p2249_p3), [#allocation2], %s1121_s11 }
  0x59   : > { %1570 = dma.done.wait (%p2250_p7), %s225_s12, 4096  }
  0x5a   : > { %1572 = vsyncadd (%p2250_p7), %s225_s12, 4294963200  ;;  %p2251_p13 = scmp.ne.s32.totalorder %s2239_s23, 0 }
  0x5c   : > { %1574 = dma.done.wait (%p2251_p13), [#allocation6], 6144  }
  0x5d   : > { %1576 = vsyncadd (%p2251_p13), [#allocation6], 4294961152  ;;  %v1615_v0 = vmov 0.0   ;;  %v298_v1 = vld [vmem:[#allocation5 + $0x8] sm:$0xff]  ;;  %v301_v2 = vld [vmem:[#allocation5 + $0x20] sm:$0xff]  ;;  %s1124_s27 = sshll.u32 %s1799_s7, 9 }
  0x5e   : > { %426 = vmatprep.mubr.f32.mxu0 %v1615_v0  ;;  %570 = vmatprep.mubr.f32.mxu1 %v1615_v0  ;;  %v297_v3 = vld [vmem:[#allocation5] sm:$0xff]  ;;  %v1264_v4 = vpack.c.bf16 %v301_v2, %v298_v1  ;;  %v300_v5 = vld [vmem:[#allocation5 + $0x18] sm:$0xff]  ;;  %v307_v7 = vld [vmem:[#allocation5 + $0x50] sm:$0xff]  ;;  %s1945_s14 = scalar_lea.vmem [#allocation7], %s1121_s11  ;;  %s1949_s21 = scalar_lea.vmem [#allocation8], %s1124_s27 }
  0x5f   : > { %v304_v6 = vld [vmem:[#allocation5 + $0x38] sm:$0xff]  ;;  %v1266_v8 = vpack.c.bf16 %v300_v5, %v297_v3  ;;  %v303_v10 = vld [vmem:[#allocation5 + $0x30] sm:$0xff]  ;;  %v306_v11 = vld [vmem:[#allocation5 + $0x48] sm:$0xff]  ;;  %s1134_s22 = sshll.u32 %s1599_s18, 12  ;;  %s961_s28 = sshll.u32 %s1945_s14, 4  ;;  %s2140_s28 = int_to_ptr.vmem [resolvable:$true] %s961_s28 }
  0x60   : > { %v1268_v9 = vpack.c.bf16 %v307_v7, %v304_v6  ;;  %v310_v12 = vld [vmem:[#allocation5 + $0x68] sm:$0xff]  ;;  %1265 = vmatprep.subr.bf16.mxu0 %v1264_v4  ;;  %1328 = vmatprep.subr.bf16.mxu1 %v1264_v4  ;;  %v313_v13 = vld [vmem:[#allocation5 + $0x80] sm:$0xff]  ;;  %v1270_v14 = vpack.c.bf16 %v306_v11, %v303_v10  ;;  %v312_v17 = vld [vmem:[#allocation5 + $0x78] sm:$0xff]  ;;  %s2132_s30 = scalar_lea.hbm %s2233_s3, %s1134_s22  ;;  %s1135_s6 = sshll.u32 %s1599_s18, 13 }
  0x61   : > { %1267 = vmatpush1.bf16.msra.mxu0 %v1266_v8  ;;  %1336 = vmatpush1.bf16.msra.mxu1 %v1266_v8  ;;  %v1272_v15 = vpack.c.bf16 %v313_v13, %v310_v12  ;;  %v309_v16 = vld [vmem:[#allocation5 + $0x60] sm:$0xff]  ;;  %v316_v18 = vld [vmem:[#allocation5 + $0x98] sm:$0xff]  ;;  %v319_v19 = vld [vmem:[#allocation5 + $0xb0] sm:$0xff]  ;;  %s980_s9 = sshll.u32 %s1949_s21, 4  ;;  %s2149_s12 = scalar_lea.hbm %s2234_s4, %s1135_s6  ;;  %s2151_s9 = int_to_ptr.vmem [resolvable:$true] %s980_s9 }
  0x62   : > { %1269 = vmatprep.subr.bf16.mxu0 %v1268_v9  ;;  %1329 = vmatprep.subr.bf16.mxu1 %v1268_v9  ;;  %v1274_v20 = vpack.c.bf16 %v312_v17, %v309_v16  ;;  %v1276_v21 = vpack.c.bf16 %v319_v19, %v316_v18  ;;  %v315_v22 = vld [vmem:[#allocation5 + $0x90] sm:$0xff]  ;;  %v318_v23 = vld [vmem:[#allocation5 + $0xa8] sm:$0xff]  ;;  %v325_v25 = vld [vmem:[#allocation5 + $0xe0] sm:$0xff]  ;;  %s1489_s23 = scalar_lea.vmem %s2140_s28, 4096  ;;  %s1616_s25 = smov [#allocation7]  }
  0x63   : > { %v322_v24 = vld [vmem:[#allocation5 + $0xc8] sm:$0xff]  ;;  %v1278_v26 = vpack.c.bf16 %v318_v23, %v315_v22  ;;  %v321_v28 = vld [vmem:[#allocation5 + $0xc0] sm:$0xff]  ;;  %v324_v29 = vld [vmem:[#allocation5 + $0xd8] sm:$0xff]  ;;  %p1490_p4 = scmp.ne.s32.totalorder %s2140_s28, %s1489_s23  ;;  %s1493_s27 = sshll.u32 %s1616_s25, 4  ;;  %s1494_s27 = int_to_ptr.vmem [resolvable:$false] %s1493_s27 }
  0x64   : > { %v1280_v27 = vpack.c.bf16 %v325_v25, %v322_v24  ;;  %v328_v30 = vld [vmem:[#allocation5 + $0xf8] sm:$0xff]  ;;  %v331_v31 = vld [vmem:[#allocation5 + $0x110] sm:$0xff]  ;;  %v1282_v32 = vpack.c.bf16 %v324_v29, %v321_v28  ;;  %v330_v35 = vld [vmem:[#allocation5 + $0x108] sm:$0xff]  ;;  %s1495_s22 = scalar_lea.vmem %s1494_s27, 8192  ;;  %p1496_p12 = scmp.lt.s32.totalorder %s2140_s28, %s1494_s27 }
  0x65   : > { %1271 = vmatpush1.bf16.msra.mxu0 %v1270_v14  ;;  %1337 = vmatpush1.bf16.msra.mxu1 %v1270_v14  ;;  %v1284_v33 = vpack.c.bf16 %v331_v31, %v328_v30  ;;  %v327_v34 = vld [vmem:[#allocation5 + $0xf0] sm:$0xff]  ;;  %v334_v36 = vld [vmem:[#allocation5 + $0x128] sm:$0xff]  ;;  %v337_v37 = vld [vmem:[#allocation5 + $0x140] sm:$0xff]  ;;  %p1491_p6 = pnand %p1490_p4, %p1743_p10  ;;  %p1497_p11 = scmp.lt.s32.totalorder %s1495_s22, %s1489_s23 }
  0x66   : > { %1273 = vmatprep.subr.bf16.mxu0 %v1272_v15  ;;  %1330 = vmatprep.subr.bf16.mxu1 %v1272_v15  ;;  %v1286_v38 = vpack.c.bf16 %v330_v35, %v327_v34  ;;  %v1288_v39 = vpack.c.bf16 %v337_v37, %v334_v36  ;;  %v333_v40 = vld [vmem:[#allocation5 + $0x120] sm:$0xff]  ;;  %v336_v41 = vld [vmem:[#allocation5 + $0x138] sm:$0xff]  ;;  %v343_v43 = vld [vmem:[#allocation5 + $0x170] sm:$0xff] }
  0x67   : > { %v340_v42 = vld [vmem:[#allocation5 + $0x158] sm:$0xff]  ;;  %v1290_v44 = vpack.c.bf16 %v336_v41, %v333_v40  ;;  %v339_v46 = vld [vmem:[#allocation5 + $0x150] sm:$0xff]  ;;  %v342_v47 = vld [vmem:[#allocation5 + $0x168] sm:$0xff]  ;;  %p1492_p8 = pneg %p1491_p6  ;;  %p1498_p0 = por %p1497_p11, %p1496_p12 }
  0x68   : > { %v1292_v45 = vpack.c.bf16 %v343_v43, %v340_v42  ;;  %v299_v48 = vld [vmem:[#allocation5 + $0x10] sm:$0xff]  ;;  %v302_v49 = vld [vmem:[#allocation5 + $0x28] sm:$0xff]  ;;  %v1294_v50 = vpack.c.bf16 %v342_v47, %v339_v46  ;;  %v305_v52 = vld [vmem:[#allocation5 + $0x40] sm:$0xff]  ;;  %v347_v42 = vlaneseq }
  0x69   : > { %1275 = vmatpush1.bf16.msra.mxu0 %v1274_v20  ;;  %1338 = vmatpush1.bf16.msra.mxu1 %v1274_v20  ;;  %v1296_v51 = vpack.c.bf16 %v302_v49, %v299_v48  ;;  %v308_v53 = vld [vmem:[#allocation5 + $0x58] sm:$0xff]  ;;  %v1818_v54 = vld [vmem:[%s1805_s29] sm:$0xff]  ;;  %v311_v57 = vld [vmem:[#allocation5 + $0x70] sm:$0xff]  ;;  %p1499_p5 = pnand %p1498_p0, %p1492_p8 }
  0x6a   : > { %1277 = vmatprep.subr.bf16.mxu0 %v1276_v21  ;;  %1331 = vmatprep.subr.bf16.mxu1 %v1276_v21  ;;  %v1821_v55 = vld [vmem:[%s1805_s29 + $0xc0] sm:$0xff]  ;;  %v1300_v56 = vpack.c.bf16 %v308_v53, %v305_v52  ;;  %v314_v58 = vld [vmem:[#allocation5 + $0x88] sm:$0xff]  ;;  %v320_v63 = vld [vmem:[#allocation5 + $0xb8] sm:$0xff]  ;;  %v1923_v43 = vshrl.u32 %v347_v42, 7 }
  0x6b   : > { %v1827_v59 = vld [vmem:[%s1805_s29 + $0x8] sm:$0xff]  ;;  %v1304_v61 = vpack.c.bf16 %v314_v58, %v311_v57  ;;  %v317_v62 = vld [vmem:[#allocation5 + $0xa0] sm:$0xff]  ;;  %v1837_v1 = vld [vmem:[%s1805_s29 + $0x10] sm:$0xff] }
  0x6c   : > { %v1830_v60 = vld [vmem:[%s1805_s29 + $0xc8] sm:$0xff]  ;;  %v1840_v2 = vld [vmem:[%s1805_s29 + $0xd0] sm:$0xff]  ;;  %v1308_v3 = vpack.c.bf16 %v320_v63, %v317_v62  ;;  %v268_v6 = vld [vmem:[%s1805_s29 + $0x18] sm:$0xff]  ;;  %v353_v46 = vsub.s32 1, %v1923_v43 }
  0x6d   : > { %1279 = vmatpush1.bf16.msra.mxu0 %v1278_v26  ;;  %1339 = vmatpush1.bf16.msra.mxu1 %v1278_v26  ;;  %v323_v4 = vld [vmem:[#allocation5 + $0xd0] sm:$0xff]  ;;  %v326_v5 = vld [vmem:[#allocation5 + $0xe8] sm:$0xff]  ;;  %v1848_v7 = vld [vmem:[%s1805_s29 + $0xd8] sm:$0xff] }
  0x6e   : > { %1281 = vmatprep.subr.bf16.mxu0 %v1280_v27  ;;  %1332 = vmatprep.subr.bf16.mxu1 %v1280_v27  ;;  %v1312_v8 = vpack.c.bf16 %v326_v5, %v323_v4  ;;  %v329_v9 = vld [vmem:[#allocation5 + $0x100] sm:$0xff]  ;;  %v332_v10 = vld [vmem:[#allocation5 + $0x118] sm:$0xff]  ;;  %v335_v14 = vld [vmem:[#allocation5 + $0x130] sm:$0xff] }
  0x6f   : > { %v269_v11 = vld [vmem:[%s1805_s29 + $0x20] sm:$0xff]  ;;  %v1316_v13 = vpack.c.bf16 %v332_v10, %v329_v9  ;;  %v338_v15 = vld [vmem:[#allocation5 + $0x148] sm:$0xff]  ;;  %v344_v20 = vld [vmem:[#allocation5 + $0x178] sm:$0xff] }
  0x70   : > { %v1855_v12 = vld [vmem:[%s1805_s29 + $0xe0] sm:$0xff]  ;;  %v270_v16 = vld [vmem:[%s1805_s29 + $0x28] sm:$0xff]  ;;  %v1320_v18 = vpack.c.bf16 %v338_v15, %v335_v14  ;;  %v271_v21 = vld [vmem:[%s1805_s29 + $0x30] sm:$0xff] }
  0x71   : > { %1283 = vmatpush1.bf16.msra.mxu0 %v1282_v32  ;;  %1340 = vmatpush1.bf16.msra.mxu1 %v1282_v32  ;;  %v1862_v17 = vld [vmem:[%s1805_s29 + $0xe8] sm:$0xff]  ;;  %v341_v19 = vld [vmem:[#allocation5 + $0x160] sm:$0xff]  ;;  %v1869_v22 = vld [vmem:[%s1805_s29 + $0xf0] sm:$0xff] }
  0x72   : > { %1285 = vmatprep.subr.bf16.mxu0 %v1284_v33  ;;  %1333 = vmatprep.subr.bf16.mxu1 %v1284_v33  ;;  %v1324_v23 = vpack.c.bf16 %v344_v20, %v341_v19  ;;  %v272_v24 = vld [vmem:[%s1805_s29 + $0x38] sm:$0xff]  ;;  %v273_v26 = vld [vmem:[%s1805_s29 + $0x40] sm:$0xff]  ;;  %v274_v27 = vld [vmem:[%s1805_s29 + $0x48] sm:$0xff] }
  0x73   : > { %v1876_v25 = vld [vmem:[%s1805_s29 + $0xf8] sm:$0xff]  ;;  %v275_v28 = vld [vmem:[%s1805_s29 + $0x50] sm:$0xff]  ;;  %v277_v30 = vld [vmem:[%s1805_s29 + $0x60] sm:$0xff] }
  0x74   : > { %v276_v29 = vld [vmem:[%s1805_s29 + $0x58] sm:$0xff]  ;;  %v278_v31 = vld [vmem:[%s1805_s29 + $0x68] sm:$0xff]  ;;  %v279_v32 = vld [vmem:[%s1805_s29 + $0x70] sm:$0xff] }
  0x75   : > { %1287 = vmatpush1.bf16.msra.mxu0 %v1286_v38  ;;  %1341 = vmatpush1.bf16.msra.mxu1 %v1286_v38  ;;  %v280_v33 = vld [vmem:[%s1805_s29 + $0x78] sm:$0xff]  ;;  %v281_v34 = vld [vmem:[%s1805_s29 + $0x80] sm:$0xff]  ;;  %v282_v35 = vld [vmem:[%s1805_s29 + $0x88] sm:$0xff] }
  0x76   : > { %1289 = vmatprep.subr.bf16.mxu0 %v1288_v39  ;;  %1334 = vmatprep.subr.bf16.mxu1 %v1288_v39  ;;  %v283_v36 = vld [vmem:[%s1805_s29 + $0x90] sm:$0xff]  ;;  %v284_v37 = vld [vmem:[%s1805_s29 + $0x98] sm:$0xff]  ;;  %v285_v38 = vld [vmem:[%s1805_s29 + $0xa0] sm:$0xff] }
  0x77   : > { %v286_v39 = vld [vmem:[%s1805_s29 + $0xa8] sm:$0xff]  ;;  %v287_v40 = vld [vmem:[%s1805_s29 + $0xb0] sm:$0xff]  ;;  %v288_v41 = vld [vmem:[%s1805_s29 + $0xb8] sm:$0xff]  ;;  %s941_s29 = scalar_lea.sflag [#allocation4], %s1799_s7 }
  0x79   : > { %1291 = vmatpush1.bf16.msra.mxu0 %v1290_v44  ;;  %1342 = vmatpush1.bf16.msra.mxu1 %v1290_v44  ;;  %v349_v44 = vsub.s32 0, %v1923_v43 }
  0x7a   : > { %1293 = vmatprep.subr.bf16.mxu0 %v1292_v45  ;;  %1335 = vmatprep.subr.bf16.mxu1 %v1292_v45  ;;  %v1929_v45 = vld [vmem:[%s2232_s2] sm:$0x7] }
  0x7b   : > { %v1937_v47 = vrot.slane %v1929_v45, %v353_v46 }
  0x7d   : > { %1295 = vmatpush1.bf16.msra.mxu0 %v1294_v50  ;;  %1343 = vmatpush1.bf16.msra.mxu1 %v1294_v50 }
  0x7e   : > { %1297 = vmatprep.subr.bf16.mxu1 %v1296_v51 }
  0x80   : > { %427 = vmatmul.mubr.f32.vlgmr.msra.gmra.mrb[0].mxu0 %v1818_v54  ;;  %571 = vmatmul.mubr.f32.vlgmr.msra.gmra.mrb[0].mxu1 %v1821_v55 }
  0x81   : > { %1299 = vmatpush3.bf16.msra.mxu1 %v1296_v51  ;;  %432 = vmatprep.mubr.f32.mxu0 %v1615_v0 }
  0x82   : > { %576 = vmatprep.mubr.f32.mxu1 %v1615_v0  ;;  %1301 = vmatprep.subr.bf16.mxu1 %v1300_v56 }
  0x84   : > { %433 = vmatmul.mubr.f32.gmra.mrb[2].mxu0 %v1827_v59  ;;  %577 = vmatmul.mubr.f32.gmra.mrb[2].mxu1 %v1830_v60 }
  0x85   : > { %1303 = vmatpush3.bf16.msra.mxu1 %v1300_v56  ;;  %438 = vmatprep.mubr.f32.mxu0 %v1615_v0 }
  0x86   : > { %582 = vmatprep.mubr.f32.mxu1 %v1615_v0  ;;  %1305 = vmatprep.subr.bf16.mxu1 %v1304_v61 }
  0x88   : > { %439 = vmatmul.mubr.f32.gmra.mrb[4].mxu0 %v1837_v1  ;;  %583 = vmatmul.mubr.f32.gmra.mrb[4].mxu1 %v1840_v2 }
  0x89   : > { %1307 = vmatpush3.bf16.msra.mxu1 %v1304_v61  ;;  %444 = vmatprep.mubr.f32.mxu0 %v1615_v0 }
  0x8a   : > { %588 = vmatprep.mubr.f32.mxu1 %v1615_v0  ;;  %1309 = vmatprep.subr.bf16.mxu1 %v1308_v3 }
  0x8c   : > { %445 = vmatmul.mubr.f32.gmra.mrb[6].mxu0 %v268_v6  ;;  %589 = vmatmul.mubr.f32.gmra.mrb[6].mxu1 %v1848_v7 }
  0x8d   : > { %1311 = vmatpush3.bf16.msra.mxu1 %v1308_v3  ;;  %450 = vmatprep.mubr.f32.mxu0 %v1615_v0 }
  0x8e   : > { %594 = vmatprep.mubr.f32.mxu1 %v1615_v0  ;;  %1313 = vmatprep.subr.bf16.mxu1 %v1312_v8 }
  0x90   : > { %451 = vmatmul.mubr.f32.gmra.mrb[8].mxu0 %v269_v11  ;;  %595 = vmatmul.mubr.f32.gmra.mrb[8].mxu1 %v1855_v12 }
  0x91   : > { %1315 = vmatpush3.bf16.msra.mxu1 %v1312_v8  ;;  %456 = vmatprep.mubr.f32.mxu0 %v1615_v0 }
  0x92   : > { %600 = vmatprep.mubr.f32.mxu1 %v1615_v0  ;;  %1317 = vmatprep.subr.bf16.mxu1 %v1316_v13 }
  0x94   : > { %457 = vmatmul.mubr.f32.gmra.mrb[10].mxu0 %v270_v16  ;;  %601 = vmatmul.mubr.f32.gmra.mrb[10].mxu1 %v1862_v17 }
  0x95   : > { %1319 = vmatpush3.bf16.msra.mxu1 %v1316_v13  ;;  %462 = vmatprep.mubr.f32.mxu0 %v1615_v0 }
  0x96   : > { %606 = vmatprep.mubr.f32.mxu1 %v1615_v0  ;;  %1321 = vmatprep.subr.bf16.mxu1 %v1320_v18 }
  0x98   : > { %463 = vmatmul.mubr.f32.gmra.mrb[12].mxu0 %v271_v21  ;;  %607 = vmatmul.mubr.f32.gmra.mrb[12].mxu1 %v1869_v22 }
  0x99   : > { %1323 = vmatpush3.bf16.msra.mxu1 %v1320_v18  ;;  %468 = vmatprep.mubr.f32.mxu0 %v1615_v0 }
  0x9a   : > { %612 = vmatprep.mubr.f32.mxu1 %v1615_v0  ;;  %1325 = vmatprep.subr.bf16.mxu1 %v1324_v23 }
  0x9c   : > { %469 = vmatmul.mubr.f32.gmra.mrb[14].mxu0 %v272_v24  ;;  %613 = vmatmul.mubr.f32.gmra.mrb[14].mxu1 %v1876_v25 }
  0x9d   : > { %1327 = vmatpush3.bf16.msra.mxu1 %v1324_v23  ;;  %474 = vmatprep.mubr.f32.mxu0 %v1615_v0 }
  0x9e   : > { %1216 = vmatprep.mubr.f32.mxu1 %v1818_v54 }
  0xa0   : > { %475 = vmatmul.mubr.f32.gmra.mrb[16].mxu0 %v273_v26  ;;  %1217 = vmatmul.mubr.f32.vlgmr.msra.gmra.mrb[16].mxu1 %v1827_v59 }
  0xa1   : > { %480 = vmatprep.mubr.f32.mxu0 %v1615_v0  ;;  %1219 = vmatprep.mubr.f32.mxu1 %v1837_v1 }
  0xa4   : > { %481 = vmatmul.mubr.f32.gmra.mrb[18].mxu0 %v274_v27  ;;  %1220 = vmatmul.mubr.f32.gmra.mrb[18].mxu1 %v268_v6 }
  0xa5   : > { %486 = vmatprep.mubr.f32.mxu0 %v1615_v0  ;;  %1222 = vmatprep.mubr.f32.mxu1 %v269_v11 }
  0xa8   : > { %487 = vmatmul.mubr.f32.gmra.mrb[20].mxu0 %v275_v28  ;;  %1223 = vmatmul.mubr.f32.gmra.mrb[20].mxu1 %v270_v16 }
  0xa9   : > { %492 = vmatprep.mubr.f32.mxu0 %v1615_v0  ;;  %1225 = vmatprep.mubr.f32.mxu1 %v271_v21 }
  0xac   : > { %493 = vmatmul.mubr.f32.gmra.mrb[22].mxu0 %v276_v29  ;;  %1226 = vmatmul.mubr.f32.gmra.mrb[22].mxu1 %v272_v24 }
  0xad   : > { %498 = vmatprep.mubr.f32.mxu0 %v1615_v0  ;;  %1228 = vmatprep.mubr.f32.mxu1 %v273_v26 }
  0xb0   : > { %499 = vmatmul.mubr.f32.gmra.mrb[24].mxu0 %v277_v30  ;;  %1229 = vmatmul.mubr.f32.gmra.mrb[24].mxu1 %v274_v27 }
  0xb1   : > { %504 = vmatprep.mubr.f32.mxu0 %v1615_v0  ;;  %1231 = vmatprep.mubr.f32.mxu1 %v275_v28 }
  0xb4   : > { %505 = vmatmul.mubr.f32.gmra.mrb[26].mxu0 %v278_v31  ;;  %1232 = vmatmul.mubr.f32.gmra.mrb[26].mxu1 %v276_v29 }
  0xb5   : > { %510 = vmatprep.mubr.f32.mxu0 %v1615_v0  ;;  %1234 = vmatprep.mubr.f32.mxu1 %v277_v30 }
  0xb8   : > { %511 = vmatmul.mubr.f32.gmra.mrb[28].mxu0 %v279_v32  ;;  %1235 = vmatmul.mubr.f32.gmra.mrb[28].mxu1 %v278_v31 }
  0xb9   : > { %516 = vmatprep.mubr.f32.mxu0 %v1615_v0  ;;  %1237 = vmatprep.mubr.f32.mxu1 %v279_v32 }
  0xbc   : > { %517 = vmatmul.mubr.f32.gmra.mrb[30].mxu0 %v280_v33  ;;  %1238 = vmatmul.mubr.f32.gmra.mrb[30].mxu1 %v280_v33 }
  0xbd   : > { %522 = vmatprep.mubr.f32.mxu0 %v1615_v0  ;;  %1240 = vmatprep.mubr.f32.mxu1 %v281_v34 }
  0xc0   : > { %523 = vmatmul.mubr.f32.gmra.mrb[32].mxu0 %v281_v34  ;;  %1241 = vmatmul.mubr.f32.gmra.mrb[32].mxu1 %v282_v35 }
  0xc1   : > { %528 = vmatprep.mubr.f32.mxu0 %v1615_v0  ;;  %1243 = vmatprep.mubr.f32.mxu1 %v283_v36 }
  0xc4   : > { %529 = vmatmul.mubr.f32.gmra.mrb[34].mxu0 %v282_v35  ;;  %1244 = vmatmul.mubr.f32.gmra.mrb[34].mxu1 %v284_v37 }
  0xc5   : > { %534 = vmatprep.mubr.f32.mxu0 %v1615_v0  ;;  %1246 = vmatprep.mubr.f32.mxu1 %v285_v38 }
  0xc8   : > { %535 = vmatmul.mubr.f32.gmra.mrb[36].mxu0 %v283_v36  ;;  %1247 = vmatmul.mubr.f32.gmra.mrb[36].mxu1 %v286_v39 }
  0xc9   : > { %540 = vmatprep.mubr.f32.mxu0 %v1615_v0  ;;  %1249 = vmatprep.mubr.f32.mxu1 %v287_v40 }
  0xcc   : > { %541 = vmatmul.mubr.f32.gmra.mrb[38].mxu0 %v284_v37  ;;  %1250 = vmatmul.mubr.f32.gmra.mrb[38].mxu1 %v288_v41 }
  0xcd   : > { %546 = vmatprep.mubr.f32.mxu0 %v1615_v0  ;;  %1252 = vmatprep.mubr.f32.mxu1 %v1821_v55 }
  0xd0   : > { %547 = vmatmul.mubr.f32.gmra.mrb[40].mxu0 %v285_v38  ;;  %1253 = vmatmul.mubr.f32.gmra.mrb[40].mxu1 %v1830_v60 }
  0xd1   : > { %552 = vmatprep.mubr.f32.mxu0 %v1615_v0  ;;  %1255 = vmatprep.mubr.f32.mxu1 %v1840_v2 }
  0xd4   : > { %553 = vmatmul.mubr.f32.gmra.mrb[42].mxu0 %v286_v39  ;;  %1256 = vmatmul.mubr.f32.gmra.mrb[42].mxu1 %v1848_v7  ;;  %v357_v39 = vsub.s32 2, %v1923_v43 }
  0xd5   : > { %558 = vmatprep.mubr.f32.mxu0 %v1615_v0  ;;  %1258 = vmatprep.mubr.f32.mxu1 %v1855_v12 }
  0xd8   : > { %559 = vmatmul.mubr.f32.gmra.mrb[44].mxu0 %v287_v40  ;;  %1259 = vmatmul.mubr.f32.gmra.mrb[44].mxu1 %v1862_v17 }
  0xd9   : > { %564 = vmatprep.mubr.f32.mxu0 %v1615_v0  ;;  %1261 = vmatprep.mubr.f32.mxu1 %v1869_v22  ;;  %v1933_v0 = vrot.slane %v1929_v45, %v349_v44 }
  0xdc   : > { %565 = vmatmul.mubr.f32.gmra.mrb[46].mxu0 %v288_v41  ;;  %1262 = vmatmul.mubr.f32.gmra.mrb[46].mxu1 %v1876_v25 }
 0x153   : > { %v428_v48 = vpop.f32.mrb[0].mxu0  ;;  %v572_v49 = vpop.f32.mrb[0].mxu1 }
 0x154   : > { %v429_v50 = vadd.f32 %v428_v48, %v1933_v0  ;;  %v573_v51 = vadd.f32 %v572_v49, %v1933_v0  ;;  %v430_v52 = vpop.f32.mrb[1].mxu0  ;;  %v574_v53 = vpop.f32.mrb[1].mxu1 }
 0x155   : > { %v431_v54 = vadd.f32 %v430_v52, %v1937_v47  ;;  %v575_v55 = vadd.f32 %v574_v53, %v1937_v47 }
 0x156   : > { %844 = vst [vmem:[%s1945_s14] sm:$0xff] %v429_v50  ;;  %868 = vst [vmem:[%s1945_s14 + $0xc0] sm:$0xff] %v573_v51  ;;  %v2005_v50 = vrot.slane %v1929_v45, %v357_v39 }
 0x157   : > { %876 = vst [vmem:[%s1949_s21] sm:$0xff] %v431_v54  ;;  %924 = vst [vmem:[%s1949_s21 + $0x180] sm:$0xff] %v575_v55  ;;  %v434_v56 = vpop.f32.mrb[2].mxu0  ;;  %v578_v57 = vpop.f32.mrb[2].mxu1 }
 0x158   : > { %v435_v58 = vadd.f32 %v434_v56, %v1933_v0  ;;  %v579_v59 = vadd.f32 %v578_v57, %v1933_v0  ;;  %v436_v60 = vpop.f32.mrb[3].mxu0  ;;  %v580_v61 = vpop.f32.mrb[3].mxu1 }
 0x159   : > { %v437_v62 = vadd.f32 %v436_v60, %v1937_v47  ;;  %v581_v63 = vadd.f32 %v580_v61, %v1937_v47 }
 0x15a   : > { %845 = vst [vmem:[%s1945_s14 + $0x8] sm:$0xff] %v435_v58  ;;  %869 = vst [vmem:[%s1945_s14 + $0xc8] sm:$0xff] %v579_v59 }
 0x15b   : > { %878 = vst [vmem:[%s1949_s21 + $0x10] sm:$0xff] %v437_v62  ;;  %926 = vst [vmem:[%s1949_s21 + $0x190] sm:$0xff] %v581_v63  ;;  %v440_v1 = vpop.f32.mrb[4].mxu0  ;;  %v584_v2 = vpop.f32.mrb[4].mxu1 }
 0x15c   : > { %v441_v3 = vadd.f32 %v440_v1, %v1933_v0  ;;  %v585_v4 = vadd.f32 %v584_v2, %v1933_v0  ;;  %v442_v5 = vpop.f32.mrb[5].mxu0  ;;  %v586_v6 = vpop.f32.mrb[5].mxu1 }
 0x15d   : > { %v443_v7 = vadd.f32 %v442_v5, %v1937_v47  ;;  %v587_v8 = vadd.f32 %v586_v6, %v1937_v47 }
 0x15e   : > { %846 = vst [vmem:[%s1945_s14 + $0x10] sm:$0xff] %v441_v3  ;;  %870 = vst [vmem:[%s1945_s14 + $0xd0] sm:$0xff] %v585_v4 }
 0x15f   : > { %880 = vst [vmem:[%s1949_s21 + $0x20] sm:$0xff] %v443_v7  ;;  %928 = vst [vmem:[%s1949_s21 + $0x1a0] sm:$0xff] %v587_v8  ;;  %v446_v9 = vpop.f32.mrb[6].mxu0  ;;  %v590_v10 = vpop.f32.mrb[6].mxu1 }
 0x160   : > { %v447_v11 = vadd.f32 %v446_v9, %v1933_v0  ;;  %v591_v12 = vadd.f32 %v590_v10, %v1933_v0  ;;  %v448_v13 = vpop.f32.mrb[7].mxu0  ;;  %v592_v14 = vpop.f32.mrb[7].mxu1 }
 0x161   : > { %v449_v15 = vadd.f32 %v448_v13, %v1937_v47  ;;  %v593_v16 = vadd.f32 %v592_v14, %v1937_v47 }
 0x162   : > { %847 = vst [vmem:[%s1945_s14 + $0x18] sm:$0xff] %v447_v11  ;;  %871 = vst [vmem:[%s1945_s14 + $0xd8] sm:$0xff] %v591_v12 }
 0x163   : > { %882 = vst [vmem:[%s1949_s21 + $0x30] sm:$0xff] %v449_v15  ;;  %930 = vst [vmem:[%s1949_s21 + $0x1b0] sm:$0xff] %v593_v16  ;;  %v452_v17 = vpop.f32.mrb[8].mxu0  ;;  %v596_v18 = vpop.f32.mrb[8].mxu1 }
 0x164   : > { %v453_v19 = vadd.f32 %v452_v17, %v1933_v0  ;;  %v597_v20 = vadd.f32 %v596_v18, %v1933_v0  ;;  %v454_v21 = vpop.f32.mrb[9].mxu0  ;;  %v598_v22 = vpop.f32.mrb[9].mxu1 }
 0x165   : > { %v455_v23 = vadd.f32 %v454_v21, %v1937_v47  ;;  %v599_v24 = vadd.f32 %v598_v22, %v1937_v47 }
 0x166   : > { %848 = vst [vmem:[%s1945_s14 + $0x20] sm:$0xff] %v453_v19  ;;  %872 = vst [vmem:[%s1945_s14 + $0xe0] sm:$0xff] %v597_v20 }
 0x167   : > { %884 = vst [vmem:[%s1949_s21 + $0x40] sm:$0xff] %v455_v23  ;;  %932 = vst [vmem:[%s1949_s21 + $0x1c0] sm:$0xff] %v599_v24  ;;  %v458_v25 = vpop.f32.mrb[10].mxu0  ;;  %v602_v26 = vpop.f32.mrb[10].mxu1 }
 0x168   : > { %v459_v27 = vadd.f32 %v458_v25, %v1933_v0  ;;  %v603_v28 = vadd.f32 %v602_v26, %v1933_v0  ;;  %v460_v29 = vpop.f32.mrb[11].mxu0  ;;  %v604_v30 = vpop.f32.mrb[11].mxu1 }
 0x169   : > { %v461_v31 = vadd.f32 %v460_v29, %v1937_v47  ;;  %v605_v32 = vadd.f32 %v604_v30, %v1937_v47 }
 0x16a   : > { %849 = vst [vmem:[%s1945_s14 + $0x28] sm:$0xff] %v459_v27  ;;  %873 = vst [vmem:[%s1945_s14 + $0xe8] sm:$0xff] %v603_v28 }
 0x16b   : > { %886 = vst [vmem:[%s1949_s21 + $0x50] sm:$0xff] %v461_v31  ;;  %934 = vst [vmem:[%s1949_s21 + $0x1d0] sm:$0xff] %v605_v32  ;;  %v464_v33 = vpop.f32.mrb[12].mxu0  ;;  %v608_v34 = vpop.f32.mrb[12].mxu1 }
 0x16c   : > { %v465_v35 = vadd.f32 %v464_v33, %v1933_v0  ;;  %v609_v36 = vadd.f32 %v608_v34, %v1933_v0  ;;  %v466_v37 = vpop.f32.mrb[13].mxu0  ;;  %v610_v38 = vpop.f32.mrb[13].mxu1 }
 0x16d   : > { %v467_v40 = vadd.f32 %v466_v37, %v1937_v47  ;;  %v611_v41 = vadd.f32 %v610_v38, %v1937_v47 }
 0x16e   : > { %850 = vst [vmem:[%s1945_s14 + $0x30] sm:$0xff] %v465_v35  ;;  %874 = vst [vmem:[%s1945_s14 + $0xf0] sm:$0xff] %v609_v36 }
 0x16f   : > { %888 = vst [vmem:[%s1949_s21 + $0x60] sm:$0xff] %v467_v40  ;;  %936 = vst [vmem:[%s1949_s21 + $0x1e0] sm:$0xff] %v611_v41  ;;  %v470_v42 = vpop.f32.mrb[14].mxu0  ;;  %v614_v44 = vpop.f32.mrb[14].mxu1 }
 0x170   : > { %v471_v46 = vadd.f32 %v470_v42, %v1933_v0  ;;  %v615_v48 = vadd.f32 %v614_v44, %v1933_v0  ;;  %v472_v49 = vpop.f32.mrb[15].mxu0  ;;  %v616_v43 = vpop.f32.mrb[15].mxu1 }
 0x171   : > { %v473_v51 = vadd.f32 %v472_v49, %v1937_v47  ;;  %v617_v52 = vadd.f32 %v616_v43, %v1937_v47 }
 0x172   : > { %851 = vst [vmem:[%s1945_s14 + $0x38] sm:$0xff] %v471_v46  ;;  %875 = vst [vmem:[%s1945_s14 + $0xf8] sm:$0xff] %v615_v48 }
 0x173   : > { %890 = vst [vmem:[%s1949_s21 + $0x70] sm:$0xff] %v473_v51  ;;  %938 = vst [vmem:[%s1949_s21 + $0x1f0] sm:$0xff] %v617_v52  ;;  %v476_v53 = vpop.f32.mrb[16].mxu0  ;;  %v1218_v54 = vpop.f32.mrb[16].mxu1 }
 0x174   : > { %v477_v55 = vadd.f32 %v476_v53, %v1933_v0  ;;  %v691_v56 = vadd.f32 %v1218_v54, %v2005_v50  ;;  %v478_v57 = vpop.f32.mrb[17].mxu0  ;;  %v685_v45 = vpop.f32.mrb[17].mxu1 }
 0x175   : > { %v479_v58 = vadd.f32 %v478_v57, %v1937_v47  ;;  %v686_v59 = vadd.f32 %v685_v45, %v2005_v50 }
 0x176   : > { %852 = vst [vmem:[%s1945_s14 + $0x40] sm:$0xff] %v477_v55  ;;  %879 = vst [vmem:[%s1949_s21 + $0x18] sm:$0xff] %v691_v56 }
 0x177   : > { %892 = vst [vmem:[%s1949_s21 + $0x80] sm:$0xff] %v479_v58  ;;  %877 = vst [vmem:[%s1949_s21 + $0x8] sm:$0xff] %v686_v59  ;;  %v482_v60 = vpop.f32.mrb[18].mxu0  ;;  %v1221_v61 = vpop.f32.mrb[18].mxu1 }
 0x178   : > { %v483_v62 = vadd.f32 %v482_v60, %v1933_v0  ;;  %v701_v63 = vadd.f32 %v1221_v61, %v2005_v50  ;;  %v484_v1 = vpop.f32.mrb[19].mxu0  ;;  %v695_v2 = vpop.f32.mrb[19].mxu1 }
 0x179   : > { %v485_v3 = vadd.f32 %v484_v1, %v1937_v47  ;;  %v696_v4 = vadd.f32 %v695_v2, %v2005_v50 }
 0x17a   : > { %853 = vst [vmem:[%s1945_s14 + $0x48] sm:$0xff] %v483_v62  ;;  %883 = vst [vmem:[%s1949_s21 + $0x38] sm:$0xff] %v701_v63 }
 0x17b   : > { %894 = vst [vmem:[%s1949_s21 + $0x90] sm:$0xff] %v485_v3  ;;  %881 = vst [vmem:[%s1949_s21 + $0x28] sm:$0xff] %v696_v4  ;;  %v488_v5 = vpop.f32.mrb[20].mxu0  ;;  %v1224_v6 = vpop.f32.mrb[20].mxu1 }
 0x17c   : > { %v489_v7 = vadd.f32 %v488_v5, %v1933_v0  ;;  %v711_v8 = vadd.f32 %v1224_v6, %v2005_v50  ;;  %v490_v9 = vpop.f32.mrb[21].mxu0  ;;  %v705_v10 = vpop.f32.mrb[21].mxu1 }
 0x17d   : > { %v491_v11 = vadd.f32 %v490_v9, %v1937_v47  ;;  %v706_v12 = vadd.f32 %v705_v10, %v2005_v50 }
 0x17e   : > { %854 = vst [vmem:[%s1945_s14 + $0x50] sm:$0xff] %v489_v7  ;;  %887 = vst [vmem:[%s1949_s21 + $0x58] sm:$0xff] %v711_v8 }
 0x17f   : > { %896 = vst [vmem:[%s1949_s21 + $0xa0] sm:$0xff] %v491_v11  ;;  %885 = vst [vmem:[%s1949_s21 + $0x48] sm:$0xff] %v706_v12  ;;  %v494_v13 = vpop.f32.mrb[22].mxu0  ;;  %v1227_v14 = vpop.f32.mrb[22].mxu1 }
 0x180   : > { %v495_v15 = vadd.f32 %v494_v13, %v1933_v0  ;;  %v721_v16 = vadd.f32 %v1227_v14, %v2005_v50  ;;  %v496_v17 = vpop.f32.mrb[23].mxu0  ;;  %v715_v18 = vpop.f32.mrb[23].mxu1 }
 0x181   : > { %v497_v19 = vadd.f32 %v496_v17, %v1937_v47  ;;  %v716_v20 = vadd.f32 %v715_v18, %v2005_v50 }
 0x182   : > { %855 = vst [vmem:[%s1945_s14 + $0x58] sm:$0xff] %v495_v15  ;;  %891 = vst [vmem:[%s1949_s21 + $0x78] sm:$0xff] %v721_v16 }
 0x183   : > { %898 = vst [vmem:[%s1949_s21 + $0xb0] sm:$0xff] %v497_v19  ;;  %889 = vst [vmem:[%s1949_s21 + $0x68] sm:$0xff] %v716_v20  ;;  %v500_v21 = vpop.f32.mrb[24].mxu0  ;;  %v1230_v22 = vpop.f32.mrb[24].mxu1 }
 0x184   : > { %v501_v23 = vadd.f32 %v500_v21, %v1933_v0  ;;  %v731_v24 = vadd.f32 %v1230_v22, %v2005_v50  ;;  %v502_v25 = vpop.f32.mrb[25].mxu0  ;;  %v725_v26 = vpop.f32.mrb[25].mxu1 }
 0x185   : > { %v503_v27 = vadd.f32 %v502_v25, %v1937_v47  ;;  %v726_v28 = vadd.f32 %v725_v26, %v2005_v50 }
 0x186   : > { %856 = vst [vmem:[%s1945_s14 + $0x60] sm:$0xff] %v501_v23  ;;  %895 = vst [vmem:[%s1949_s21 + $0x98] sm:$0xff] %v731_v24 }
 0x187   : > { %900 = vst [vmem:[%s1949_s21 + $0xc0] sm:$0xff] %v503_v27  ;;  %893 = vst [vmem:[%s1949_s21 + $0x88] sm:$0xff] %v726_v28  ;;  %v506_v29 = vpop.f32.mrb[26].mxu0  ;;  %v1233_v30 = vpop.f32.mrb[26].mxu1 }
 0x188   : > { %v507_v31 = vadd.f32 %v506_v29, %v1933_v0  ;;  %v741_v32 = vadd.f32 %v1233_v30, %v2005_v50  ;;  %v508_v33 = vpop.f32.mrb[27].mxu0  ;;  %v735_v34 = vpop.f32.mrb[27].mxu1 }
 0x189   : > { %v509_v35 = vadd.f32 %v508_v33, %v1937_v47  ;;  %v736_v36 = vadd.f32 %v735_v34, %v2005_v50 }
 0x18a   : > { %857 = vst [vmem:[%s1945_s14 + $0x68] sm:$0xff] %v507_v31  ;;  %899 = vst [vmem:[%s1949_s21 + $0xb8] sm:$0xff] %v741_v32 }
 0x18b   : > { %902 = vst [vmem:[%s1949_s21 + $0xd0] sm:$0xff] %v509_v35  ;;  %897 = vst [vmem:[%s1949_s21 + $0xa8] sm:$0xff] %v736_v36  ;;  %v512_v37 = vpop.f32.mrb[28].mxu0  ;;  %v1236_v38 = vpop.f32.mrb[28].mxu1 }
 0x18c   : > { %v513_v39 = vadd.f32 %v512_v37, %v1933_v0  ;;  %v751_v40 = vadd.f32 %v1236_v38, %v2005_v50  ;;  %v514_v41 = vpop.f32.mrb[29].mxu0  ;;  %v745_v42 = vpop.f32.mrb[29].mxu1 }
 0x18d   : > { %v515_v44 = vadd.f32 %v514_v41, %v1937_v47  ;;  %v746_v46 = vadd.f32 %v745_v42, %v2005_v50 }
 0x18e   : > { %858 = vst [vmem:[%s1945_s14 + $0x70] sm:$0xff] %v513_v39  ;;  %903 = vst [vmem:[%s1949_s21 + $0xd8] sm:$0xff] %v751_v40 }
 0x18f   : > { %904 = vst [vmem:[%s1949_s21 + $0xe0] sm:$0xff] %v515_v44  ;;  %901 = vst [vmem:[%s1949_s21 + $0xc8] sm:$0xff] %v746_v46  ;;  %v518_v48 = vpop.f32.mrb[30].mxu0  ;;  %v1239_v49 = vpop.f32.mrb[30].mxu1 }
 0x190   : > { %v519_v43 = vadd.f32 %v518_v48, %v1933_v0  ;;  %v761_v51 = vadd.f32 %v1239_v49, %v2005_v50  ;;  %v520_v52 = vpop.f32.mrb[31].mxu0  ;;  %v755_v53 = vpop.f32.mrb[31].mxu1 }
 0x191   : > { %v521_v54 = vadd.f32 %v520_v52, %v1937_v47  ;;  %v756_v55 = vadd.f32 %v755_v53, %v2005_v50 }
 0x192   : > { %859 = vst [vmem:[%s1945_s14 + $0x78] sm:$0xff] %v519_v43  ;;  %907 = vst [vmem:[%s1949_s21 + $0xf8] sm:$0xff] %v761_v51 }
 0x193   : > { %906 = vst [vmem:[%s1949_s21 + $0xf0] sm:$0xff] %v521_v54  ;;  %905 = vst [vmem:[%s1949_s21 + $0xe8] sm:$0xff] %v756_v55  ;;  %v524_v56 = vpop.f32.mrb[32].mxu0  ;;  %v1242_v57 = vpop.f32.mrb[32].mxu1 }
 0x194   : > { %v525_v45 = vadd.f32 %v524_v56, %v1933_v0  ;;  %v771_v58 = vadd.f32 %v1242_v57, %v2005_v50  ;;  %v526_v59 = vpop.f32.mrb[33].mxu0  ;;  %v765_v60 = vpop.f32.mrb[33].mxu1 }
 0x195   : > { %v527_v61 = vadd.f32 %v526_v59, %v1937_v47  ;;  %v766_v62 = vadd.f32 %v765_v60, %v2005_v50 }
 0x196   : > { %860 = vst [vmem:[%s1945_s14 + $0x80] sm:$0xff] %v525_v45  ;;  %911 = vst [vmem:[%s1949_s21 + $0x118] sm:$0xff] %v771_v58 }
 0x197   : > { %908 = vst [vmem:[%s1949_s21 + $0x100] sm:$0xff] %v527_v61  ;;  %909 = vst [vmem:[%s1949_s21 + $0x108] sm:$0xff] %v766_v62  ;;  %v530_v63 = vpop.f32.mrb[34].mxu0  ;;  %v1245_v1 = vpop.f32.mrb[34].mxu1 }
 0x198   : > { %v531_v2 = vadd.f32 %v530_v63, %v1933_v0  ;;  %v781_v3 = vadd.f32 %v1245_v1, %v2005_v50  ;;  %v532_v4 = vpop.f32.mrb[35].mxu0  ;;  %v775_v5 = vpop.f32.mrb[35].mxu1 }
 0x199   : > { %v533_v6 = vadd.f32 %v532_v4, %v1937_v47  ;;  %v776_v7 = vadd.f32 %v775_v5, %v2005_v50 }
 0x19a   : > { %861 = vst [vmem:[%s1945_s14 + $0x88] sm:$0xff] %v531_v2  ;;  %915 = vst [vmem:[%s1949_s21 + $0x138] sm:$0xff] %v781_v3 }
 0x19b   : > { %910 = vst [vmem:[%s1949_s21 + $0x110] sm:$0xff] %v533_v6  ;;  %913 = vst [vmem:[%s1949_s21 + $0x128] sm:$0xff] %v776_v7  ;;  %v536_v8 = vpop.f32.mrb[36].mxu0  ;;  %v1248_v9 = vpop.f32.mrb[36].mxu1 }
 0x19c   : > { %v537_v10 = vadd.f32 %v536_v8, %v1933_v0  ;;  %v791_v11 = vadd.f32 %v1248_v9, %v2005_v50  ;;  %v538_v12 = vpop.f32.mrb[37].mxu0  ;;  %v785_v13 = vpop.f32.mrb[37].mxu1 }
 0x19d   : > { %v539_v14 = vadd.f32 %v538_v12, %v1937_v47  ;;  %v786_v15 = vadd.f32 %v785_v13, %v2005_v50 }
 0x19e   : > { %862 = vst [vmem:[%s1945_s14 + $0x90] sm:$0xff] %v537_v10  ;;  %919 = vst [vmem:[%s1949_s21 + $0x158] sm:$0xff] %v791_v11 }
 0x19f   : > { %912 = vst [vmem:[%s1949_s21 + $0x120] sm:$0xff] %v539_v14  ;;  %917 = vst [vmem:[%s1949_s21 + $0x148] sm:$0xff] %v786_v15  ;;  %v542_v16 = vpop.f32.mrb[38].mxu0  ;;  %v1251_v17 = vpop.f32.mrb[38].mxu1 }
 0x1a0   : > { %v543_v18 = vadd.f32 %v542_v16, %v1933_v0  ;;  %v801_v19 = vadd.f32 %v1251_v17, %v2005_v50  ;;  %v544_v20 = vpop.f32.mrb[39].mxu0  ;;  %v795_v21 = vpop.f32.mrb[39].mxu1 }
 0x1a1   : > { %v545_v22 = vadd.f32 %v544_v20, %v1937_v47  ;;  %v796_v23 = vadd.f32 %v795_v21, %v2005_v50 }
 0x1a2   : > { %863 = vst [vmem:[%s1945_s14 + $0x98] sm:$0xff] %v543_v18  ;;  %923 = vst [vmem:[%s1949_s21 + $0x178] sm:$0xff] %v801_v19 }
 0x1a3   : > { %914 = vst [vmem:[%s1949_s21 + $0x130] sm:$0xff] %v545_v22  ;;  %921 = vst [vmem:[%s1949_s21 + $0x168] sm:$0xff] %v796_v23  ;;  %v548_v24 = vpop.f32.mrb[40].mxu0  ;;  %v1254_v25 = vpop.f32.mrb[40].mxu1 }
 0x1a4   : > { %v549_v26 = vadd.f32 %v548_v24, %v1933_v0  ;;  %v811_v27 = vadd.f32 %v1254_v25, %v2005_v50  ;;  %v550_v28 = vpop.f32.mrb[41].mxu0  ;;  %v805_v29 = vpop.f32.mrb[41].mxu1 }
 0x1a5   : > { %v551_v30 = vadd.f32 %v550_v28, %v1937_v47  ;;  %v806_v31 = vadd.f32 %v805_v29, %v2005_v50 }
 0x1a6   : > { %864 = vst [vmem:[%s1945_s14 + $0xa0] sm:$0xff] %v549_v26  ;;  %927 = vst [vmem:[%s1949_s21 + $0x198] sm:$0xff] %v811_v27 }
 0x1a7   : > { %916 = vst [vmem:[%s1949_s21 + $0x140] sm:$0xff] %v551_v30  ;;  %925 = vst [vmem:[%s1949_s21 + $0x188] sm:$0xff] %v806_v31  ;;  %v554_v32 = vpop.f32.mrb[42].mxu0  ;;  %v1257_v33 = vpop.f32.mrb[42].mxu1 }
 0x1a8   : > { %v555_v34 = vadd.f32 %v554_v32, %v1933_v0  ;;  %v821_v35 = vadd.f32 %v1257_v33, %v2005_v50  ;;  %v556_v36 = vpop.f32.mrb[43].mxu0  ;;  %v815_v37 = vpop.f32.mrb[43].mxu1 }
 0x1a9   : > { %v557_v38 = vadd.f32 %v556_v36, %v1937_v47  ;;  %v816_v39 = vadd.f32 %v815_v37, %v2005_v50 }
 0x1aa   : > { %865 = vst [vmem:[%s1945_s14 + $0xa8] sm:$0xff] %v555_v34  ;;  %931 = vst [vmem:[%s1949_s21 + $0x1b8] sm:$0xff] %v821_v35 }
 0x1ab   : > { %918 = vst [vmem:[%s1949_s21 + $0x150] sm:$0xff] %v557_v38  ;;  %929 = vst [vmem:[%s1949_s21 + $0x1a8] sm:$0xff] %v816_v39  ;;  %v560_v40 = vpop.f32.mrb[44].mxu0  ;;  %v1260_v41 = vpop.f32.mrb[44].mxu1 }
 0x1ac   : > { %v561_v42 = vadd.f32 %v560_v40, %v1933_v0  ;;  %v831_v44 = vadd.f32 %v1260_v41, %v2005_v50  ;;  %v562_v46 = vpop.f32.mrb[45].mxu0  ;;  %v825_v48 = vpop.f32.mrb[45].mxu1 }
 0x1ad   : > { %v563_v49 = vadd.f32 %v562_v46, %v1937_v47  ;;  %v826_v43 = vadd.f32 %v825_v48, %v2005_v50 }
 0x1ae   : > { %866 = vst [vmem:[%s1945_s14 + $0xb0] sm:$0xff] %v561_v42  ;;  %935 = vst [vmem:[%s1949_s21 + $0x1d8] sm:$0xff] %v831_v44 }
 0x1af   : > { %920 = vst [vmem:[%s1949_s21 + $0x160] sm:$0xff] %v563_v49  ;;  %933 = vst [vmem:[%s1949_s21 + $0x1c8] sm:$0xff] %v826_v43  ;;  %v566_v51 = vpop.f32.mrb[46].mxu0  ;;  %v1263_v52 = vpop.f32.mrb[46].mxu1 }
 0x1b0   : > { %v567_v53 = vadd.f32 %v566_v51, %v1933_v0  ;;  %v841_v54 = vadd.f32 %v1263_v52, %v2005_v50  ;;  %v568_v55 = vpop.f32.mrb[47].mxu0  ;;  %v835_v56 = vpop.f32.mrb[47].mxu1 }
 0x1b1   : > { %v569_v57 = vadd.f32 %v568_v55, %v1937_v47  ;;  %v836_v45 = vadd.f32 %v835_v56, %v2005_v50 }
 0x1b2   : > { %867 = vst [vmem:[%s1945_s14 + $0xb8] sm:$0xff] %v567_v53  ;;  %939 = vst [vmem:[%s1949_s21 + $0x1f8] sm:$0xff] %v841_v54 }
 0x1b3   : > { %922 = vst [vmem:[%s1949_s21 + $0x170] sm:$0xff] %v569_v57  ;;  %937 = vst [vmem:[%s1949_s21 + $0x1e8] sm:$0xff] %v836_v45 }
 0x1b4   : > { %1502 = shalt.err (!%p1499_p5)
}
 0x1b5   : > { %s1503_s14 = scalar_lea.hbm %s2132_s30, 4096  ;;  %s1507_s24 = scalar_lea.hbm %s2233_s3, 8192 }
 0x1b6   : > { %p1504_p9 = scmp.ne.s32.totalorder %s2132_s30, %s1503_s14  ;;  %p1508_p3 = scmp.lt.u32.totalorder %s2132_s30, %s2233_s3 }
 0x1b7   : > { %p1509_p7 = scmp.lt.u32.totalorder %s1507_s24, %s1503_s14  ;;  %p1511_p4 = scmp.lt.u32.totalorder %s1503_s14, %s2132_s30 }
 0x1b8   : > { %p1505_p1 = pnand %p1504_p9, %p1743_p10 }
 0x1b9   : > { %p1510_p13 = por %p1509_p7, %p1508_p3 }
 0x1ba   : > { %p1506_p2 = pneg %p1505_p1 }
 0x1bb   : > { %p1512_p6 = por %p1511_p4, %p1510_p13 }
 0x1bd   : > { %p1513_p8 = pnand %p1512_p6, %p1506_p2 }
 0x1bf   : > { %1516 = shalt.err (!%p1513_p8)
}
 0x1c0   : > { %s1617_s11 = smov 128   ;;  %s1618_s23 = smov 8  }
 0x1c1   : > { %1350 = dma.vmem_to_hbm [thread:$0]  (%p1743_p10), %s2140_s28, 4096, %s2132_s30, %s941_s29, %s1617_s11, %s1617_s11, %s1618_s23  }
 0x1c2   : > { %s946_s25 = scalar_lea.sflag [#allocation9], %s1799_s7  ;;  %s1517_s27 = scalar_lea.vmem %s2151_s9, 8192 }
 0x1c3   : > { %p1518_p12 = scmp.ne.s32.totalorder %s2151_s9, %s1517_s27  ;;  %s1619_s22 = smov [#allocation8]  }
 0x1c4   : > { %s1521_s14 = sshll.u32 %s1619_s22, 4  ;;  %s1522_s14 = int_to_ptr.vmem [resolvable:$false] %s1521_s14 }
 0x1c5   : > { %p1519_p11 = pnand %p1518_p12, %p1743_p10  ;;  %s1523_s21 = scalar_lea.vmem %s1522_s14, 16384 }
 0x1c6   : > { %p1524_p5 = scmp.lt.s32.totalorder %s2151_s9, %s1522_s14  ;;  %p1525_p9 = scmp.lt.s32.totalorder %s1523_s21, %s1517_s27 }
 0x1c7   : > { %p1520_p0 = pneg %p1519_p11 }
 0x1c8   : > { %p1526_p1 = por %p1525_p9, %p1524_p5 }
 0x1ca   : > { %p1527_p2 = pnand %p1526_p1, %p1520_p0 }
 0x1cc   : > { %1530 = shalt.err (!%p1527_p2)
}
 0x1cd   : > { %s1531_s28 = scalar_lea.hbm %s2149_s12, 8192  ;;  %s1535_s13 = scalar_lea.hbm %s2234_s4, 16384 }
 0x1ce   : > { %p1532_p3 = scmp.ne.s32.totalorder %s2149_s12, %s1531_s28  ;;  %p1536_p4 = scmp.lt.u32.totalorder %s2149_s12, %s2234_s4 }
 0x1cf   : > { %p1537_p6 = scmp.lt.u32.totalorder %s1535_s13, %s1531_s28  ;;  %p1539_p12 = scmp.lt.u32.totalorder %s1531_s28, %s2149_s12 }
 0x1d0   : > { %p1533_p7 = pnand %p1532_p3, %p1743_p10 }
 0x1d1   : > { %p1538_p8 = por %p1537_p6, %p1536_p4 }
 0x1d2   : > { %p1534_p13 = pneg %p1533_p7 }
 0x1d3   : > { %p1540_p11 = por %p1539_p12, %p1538_p8 }
 0x1d5   : > { %p1541_p0 = pnand %p1540_p11, %p1534_p13 }
 0x1d7   : > { %1544 = shalt.err (!%p1541_p0)
}
 0x1d8   : > { %s1620_s18 = smov 256   ;;  %s1621_s11 = smov 16  }
 0x1d9   : > { %1351 = dma.vmem_to_hbm [thread:$0]  (%p1743_p10), %s2151_s9, 8192, %s2149_s12, %s946_s25, %s1620_s18, %s1620_s18, %s1621_s11  }
 0x1da PF: > { %s995_s23 = sand.u32 1, %s1587_s15   ;;  %p2252_p5 = scmp.ne.s32.totalorder %s2242_s26, 0 }
 0x1db   : > { %p2253_p9 = scmp.ge.s32.totalorder %s1607_s20, 2  ;;  %s996_s27 = scalar_lea.sflag [#allocation4], %s995_s23 }
 0x1dd   : > { %p1363_p1 = pnand %p2253_p9, %p2252_p5 }
 0x1df   : > { %1578 = dma.done.wait (!%p1363_p1), %s996_s27, 4096  }
 0x1e0   : > { %1580 = vsyncadd (!%p1363_p1), %s996_s27, 4294963200  ;;  %s1005_s22 = scalar_lea.sflag [#allocation9], %s995_s23 }
 0x1e1   : > { %1582 = dma.done.wait (!%p1363_p1), %s1005_s22, 8192  }
 0x1e2   : > { %1584 = vsyncadd (!%p1363_p1), %s1005_s22, 4294959104  ;;  %s25_s20 = sadd.s32 1, %s1607_s20   ;;  %s2254_s15 = smov %s1591_s16 }
 0x1e3   : > { %p22_p2 = scmp.ge.s32.totalorder %s25_s20, 4   ;;  %s2255_s16 = smov %s1595_s17 }
 0x1e4   : > { %s2256_s17 = smov %s1752_s10  ;;  %s2257_s18 = smov %s1603_s19 }
 0x1e5   : > { %s2258_s19 = smov %s2260_s5  ;;  %24 = sbr.rel (!%p22_p2) target bundleno = 9 (0x9), region = 98 }
 0x1ec   :  { %1010 = vsyncpa [#allocation3], 1 }
 0x1ed   :  { %1012 = vsyncpa [#allocation3 + $0x1], 1 }
 0x1ee   :  { %1013 = vsyncpa [#allocation6], 1 }
 0x1ef   :  { %1014 = vsyncpa [#allocation4], 1 }
 0x1f0   :  { %1016 = vsyncpa [#allocation4 + $0x1], 1 }
 0x1f1   :  { %1017 = vsyncpa [#allocation9], 1 }
 0x1f2   :  { %1019 = vsyncpa [#allocation9 + $0x1], 1 }

</bundles_post_ra>
